<compile_context>
chip_gen: v5e
topology: v5e:2x2
jax: 0.10.0
libtpu: 0.0.40
codegen_flags: <defaults>
</compile_context>

<pallas_src>
import functools

import jax
import jax.numpy as jnp
from jax import lax
from jax.experimental import pallas as pl
from jax.experimental.pallas import tpu as pltpu


_NT_DIMS = (((1,), (1,)), ((), ()))   # contract the last dim of both operands


def _benchmark_kernel(*refs, centers, noise_std, noise_bias, noise_mode):
    """One row-tile of the fused benchmark forward pass (lane-dense layout).

    refs (in order):
      seed_ref  : SMEM (1,) int32    scalar-prefetch RNG seed
      x_ref     : (block_n, D)       candidate points (cast to f32 in-body)
      noise_ref : (M, block_n) f32   only when noise_mode == "input"
      y_nf_ref  : (M, block_n) f32   noise-free  (-base_f(X))^T
      y_obs_ref : (M, block_n) f32   noisy observation^T
    """
    seed_ref = refs[0]
    x_ref = refs[1]
    if noise_mode == "input":
        noise_ref, y_nf_ref, y_obs_ref = refs[2], refs[3], refs[4]
    else:
        noise_ref, y_nf_ref, y_obs_ref = None, refs[2], refs[3]

    num_out, block_n = y_nf_ref.shape
    x = x_ref[...].astype(jnp.float32)                 # (block_n, D)
    # All-ones (1, D) row built purely from tracer ops (no captured constants).
    ones_row = x[:1, :] * 0.0 + 1.0

    if noise_mode == "onchip":
        # Decorrelate grid tiles; identical semantics to torch.randn_like.
        pltpu.prng_seed(seed_ref[0] + pl.program_id(0))
        noise = pltpu.stateful_normal((num_out, block_n), jnp.float32)
    elif noise_mode == "input":
        noise = noise_ref[...].astype(jnp.float32)
    else:
        noise = None

    for m in range(num_out):
        c = centers[m]
        diff = x - c                                   # (block_n, D), VPU
        # sum_d (x - c_m)^2 per point, produced directly in lane orientation by
        # contracting D on the idle MXU: (1, D) x (block_n, D)^T -> (1, block_n).
        q = lax.dot_general(
            ones_row, diff * diff, _NT_DIMS,
            precision=lax.Precision.HIGHEST,
            preferred_element_type=jnp.float32,
        )                                              # (1, block_n)
        y_nf = -q                                      # negate=True
        y_nf_ref[m:m + 1, :] = y_nf

        y_obs = y_nf + noise_bias[m]
        if noise is not None and noise_std[m] != 0.0:
            y_obs = y_obs + noise[m:m + 1, :] * noise_std[m]
        y_obs_ref[m:m + 1, :] = y_obs
        # NOTE: rows past N in a partial final tile hold garbage but only feed
        # their own output lane (D is the only contraction), and those lanes
        # are never written back.


# ----------------------------------------------------------------------------
# Wrapper-side helpers
# ----------------------------------------------------------------------------

def _round_up(v, mult):
    return (v + mult - 1) // mult * mult


_ONCHIP_RNG_SUPPORTED = None


def _onchip_rng_supported():
    """Probe (once) whether the on-chip PRNG path lowers/runs on this backend."""
    global _ONCHIP_RNG_SUPPORTED
    if _ONCHIP_RNG_SUPPORTED is None:
        try:
            def _probe(o_ref):
                pltpu.prng_seed(12345)
                o_ref[...] = pltpu.stateful_normal(o_ref.shape, jnp.float32)

            out = pl.pallas_call(
                _probe, out_shape=jax.ShapeDtypeStruct((8, 128), jnp.float32))()
            out = jax.block_until_ready(out)
            _ONCHIP_RNG_SUPPORTED = (
                bool(jnp.all(jnp.isfinite(out))) and float(jnp.std(out)) > 1e-3)
        except Exception:
            _ONCHIP_RNG_SUPPORTED = False
    return _ONCHIP_RNG_SUPPORTED


def _detect_num_tensorcores():
    """Best-effort TensorCore count (v7x has 2); conservative default is 1."""
    try:
        info = pltpu.get_tpu_info()
    except Exception:
        return 1
    for attr in ("num_cores", "core_count", "num_tensorcores",
                 "tensorcores_per_chip", "cores_per_chip"):
        v = getattr(info, attr, None)
        if isinstance(v, int) and 1 <= v <= 16:
            return v
    return 1


def _bytes_per_row(d, m, with_noise_input):
    """Pipelined VMEM bytes per row of N, INCLUDING (8, 128) tile padding."""
    lanes_x = _round_up(max(d, 1), 128)       # x tile pads its D lanes to 128
    sub_m = _round_up(max(m, 1), 8)           # outputs pad M to 8 sublanes
    per_row = 2 * lanes_x * 4                 # x, double-buffered
    per_row += 2 * 2 * sub_m * 4              # two outputs, double-buffered
    if with_noise_input:
        per_row += 2 * sub_m * 4              # streamed noise tile, double-buffered
    per_row += lanes_x * 4                    # in-kernel temporaries (diff, diff*diff)
    return per_row


def _vmem_limit_bytes(block_n, d, m, with_noise_input):
    est = _bytes_per_row(d, m, with_noise_input) * block_n + (1 << 20)
    # 16..32 MiB: explicit, and safe on v7x (64 MiB physical / 32 MiB scoped default).
    return int(min(32 << 20, max(16 << 20, 2 * est)))


def _pick_block_n(n, d, m, num_cores, with_noise_input):
    budget = 12 << 20                         # pipelined-buffer budget, v7x-safe
    per_row = _bytes_per_row(d, m, with_noise_input)
    cap_rows = max(128, min(8192, (budget // per_row) // 128 * 128))
    if n > cap_rows:
        return cap_rows                       # multiple of 128 -> legal tiled blocks
    # Whole problem fits one tile (block dims == full array dims, always legal).
    if num_cores >= 2 and n >= 256:
        # Split only when >=2 TensorCores are present (v7x); on single-TC
        # v5e/v6e extra grid steps are pure per-step overhead.
        bn = _round_up(pl.cdiv(n, num_cores), 128)
        if bn < n:
            return bn
    return n


# ----------------------------------------------------------------------------
# Public entry point
# ----------------------------------------------------------------------------

def benchmark_forward(x, noise_std, noise_bias, centers, *, seed=0, noise=None,
                      block_n=None, num_cores=None):
    """Fused Pallas equivalent of BenchmarkFunction.forward (synthetic quadratic base_f).

    x          : (N, D) float array of candidate points
    noise_std / noise_bias / centers : length-M sequences of Python floats
                 (trace-time constants folded into the kernel)
    seed       : int seed for the on-chip PRNG (torch.randn_like equivalent)
    noise      : optional (M, N) f32 standard normals; when given it is streamed
                 from HBM instead of drawing on-chip (also the automatic fallback
                 when the on-chip PRNG is unavailable on the current backend)
    returns    : (y_noise_free, y_noisy), each (N, M) f32
    """
    n, d = x.shape
    noise_std = tuple(float(s) for s in noise_std)
    noise_bias = tuple(float(b) for b in noise_bias)
    centers = tuple(float(c) for c in centers)
    m = len(centers)
    if len(noise_std) != m or len(noise_bias) != m:
        raise ValueError("noise_std / noise_bias must match the number of outputs")

    use_noise = any(s != 0.0 for s in noise_std)
    if not use_noise:
        noise_mode = "none"                   # zero-noise specialisation: no RNG at all
    elif noise is not None or not _onchip_rng_supported():
        noise_mode = "input"
        if noise is None:
            noise = jax.random.normal(jax.random.PRNGKey(seed), (m, n), jnp.float32)
    else:
        noise_mode = "onchip"

    if num_cores is None:
        num_cores = _detect_num_tensorcores()
    if block_n is None:
        block_n = _pick_block_n(n, d, m, num_cores, noise_mode == "input")

    grid = (pl.cdiv(n, block_n),)             # partial final tile handled by Pallas

    kernel = functools.partial(
        _benchmark_kernel,
        centers=centers, noise_std=noise_std, noise_bias=noise_bias,
        noise_mode=noise_mode,
    )

    x_spec = pl.BlockSpec((block_n, d), lambda i, seed_ref: (i, 0))
    in_specs = [x_spec]
    operands = [x]
    if noise_mode == "input":
        in_specs.append(pl.BlockSpec((m, block_n), lambda i, seed_ref: (0, i)))
        operands.append(noise)

    out_specs = (
        pl.BlockSpec((m, block_n), lambda i, seed_ref: (0, i)),   # noise-free (M, N)
        pl.BlockSpec((m, block_n), lambda i, seed_ref: (0, i)),   # noisy      (M, N)
    )

    seed_arr = jnp.asarray([int(seed)], dtype=jnp.int32)

    y_nf_t, y_obs_t = pl.pallas_call(
        kernel,
        out_shape=(jax.ShapeDtypeStruct((m, n), jnp.float32),
                   jax.ShapeDtypeStruct((m, n), jnp.float32)),
        grid_spec=pltpu.PrefetchScalarGridSpec(
            num_scalar_prefetch=1,
            grid=grid,
            in_specs=in_specs,
            out_specs=out_specs,
        ),
        compiler_params=pltpu.CompilerParams(
            dimension_semantics=("parallel",),
            vmem_limit_bytes=_vmem_limit_bytes(block_n, d, m, noise_mode == "input"),
        ),
    )(seed_arr, *operands)

    # The kernel works in a transposed, lane-dense (M, N) layout; restore the
    # module's (N, M) view in the wrapper (layout plumbing, not compute).
    return y_nf_t.T, y_obs_t.T


class BenchmarkFunctionJAX:
    """Thin stateful wrapper mirroring the PyTorch module's bookkeeping.

    base_f is a synthetic multi-output quadratic (the torch module takes an
    arbitrary callable, which has no generic kernel translation):
        base_f(X)[n, m] = sum_d (X[n, d] - 0.5*(m+1))**2,   negate=True.
    """

    def __init__(self, dim, num_outputs, noise_std=None, noise_bias=None):
        self.dim = dim
        self.num_outputs = num_outputs
        if noise_std is None:
            noise_std = [0.0] * num_outputs
        if len(noise_std) != num_outputs:
            raise ValueError("`observation_noise_std` must be of size `num_outputs`!")
        if noise_bias is None:
            noise_bias = [0.0] * num_outputs
        if len(noise_bias) != num_outputs:
            raise ValueError("`observation_noise_bias` must be of size `num_outputs`!")

        self._noise_std = tuple(float(s) for s in noise_std)
        self._noise_bias = tuple(float(b) for b in noise_bias)
        self._centers = tuple(0.5 * (m + 1) for m in range(num_outputs))

        self.observation_noise_std = jnp.asarray(self._noise_std, jnp.float32)
        self.observation_noise_bias = jnp.asarray(self._noise_bias, jnp.float32)

        # observation history (plain-JAX glue, as in the torch module)
        self.X = jnp.zeros((0, dim), jnp.float32)
        self.Y_noise_free = jnp.zeros((0, num_outputs), jnp.float32)

    # TODO(synk): record_current_pf_and_hv / record_all_hvs (Pareto/hypervolume
    #             bookkeeping) are host-side analytics with no kernel hot path.

    def forward(self, x, seed=0):
        self.X = jnp.concatenate([self.X, x.astype(jnp.float32)], axis=0)
        y_nf, y_obs = benchmark_forward(
            x, self._noise_std, self._noise_bias, self._centers, seed=seed)
        self.Y_noise_free = jnp.concatenate([self.Y_noise_free, y_nf], axis=0)
        return y_obs


if __name__ == "__main__":
    key = jax.random.PRNGKey(0)
    kx, kx2 = jax.random.split(key)

    # small shapes consistent with the module: batch of candidates, input dim, outputs
    N, D, M = 8, 16, 2
    x = jax.random.uniform(kx, (N, D), jnp.float32)

    centers = tuple(0.5 * (mm + 1) for mm in range(M))
    c_arr = jnp.asarray(centers, jnp.float32)

    def ref_noise_free(xs):
        base = jnp.stack(
            [jnp.sum((xs - c_arr[mm]) ** 2, axis=-1) for mm in range(M)], axis=-1)
        return -base

    y_nf_expected = ref_noise_free(x)

    # --- Case 1: default zero std, bias only -> fully deterministic ------------
    fn0 = BenchmarkFunctionJAX(dim=D, num_outputs=M, noise_bias=[0.25, -0.5])
    y0 = jax.block_until_ready(fn0.forward(x, seed=0))
    assert y0.shape == (N, M)
    assert jnp.allclose(fn0.Y_noise_free, y_nf_expected, atol=1e-3, rtol=1e-4)
    assert jnp.allclose(y0, y_nf_expected + fn0.observation_noise_bias,
                        atol=1e-3, rtol=1e-4)

    # --- Case 2: noisy observations (on-chip PRNG when available) --------------
    fn1 = BenchmarkFunctionJAX(dim=D, num_outputs=M,
                               noise_std=[0.1, 0.05], noise_bias=[0.01, -0.02])
    y1 = jax.block_until_ready(fn1.forward(x, seed=7))
    assert y1.shape == (N, M)
    assert jnp.allclose(fn1.Y_noise_free, y_nf_expected, atol=1e-3, rtol=1e-4)
    z = (y1 - y_nf_expected - fn1.observation_noise_bias) / fn1.observation_noise_std
    assert bool(jnp.all(jnp.isfinite(z)))
    assert float(jnp.max(jnp.abs(z))) < 10.0       # standard normals: sanity bounds only
    assert 0.01 < float(jnp.std(z)) < 10.0

    # --- Case 2b: explicit noise stream (deterministic check of the noise math) -
    noise_in = jax.random.normal(jax.random.PRNGKey(5), (M, N), jnp.float32)
    y_nf_b, y_obs_b = benchmark_forward(
        x, (0.1, 0.05), (0.01, -0.02), centers, noise=noise_in)
    y_obs_b = jax.block_until_ready(y_obs_b)
    y_obs_expected = (y_nf_expected
                      + noise_in.T * jnp.asarray([0.1, 0.05], jnp.float32)
                      + jnp.asarray([0.01, -0.02], jnp.float32))
    assert jnp.allclose(y_nf_b, y_nf_expected, atol=1e-3, rtol=1e-4)
    assert jnp.allclose(y_obs_b, y_obs_expected, atol=1e-3, rtol=1e-4)

    # --- Case 3: larger batch -> multi-tile grid with a partial final tile ------
    N2 = 1000
    x2 = jax.random.uniform(kx2, (N2, D), jnp.float32)
    y_nf2, y_obs2 = benchmark_forward(x2, (0.0,) * M, (0.3, -0.7), centers, block_n=256)
    y_obs2 = jax.block_until_ready(y_obs2)
    y_nf2_expected = ref_noise_free(x2)
    assert jnp.allclose(y_nf2, y_nf2_expected, atol=1e-3, rtol=1e-4)
    assert jnp.allclose(y_obs2, y_nf2_expected + jnp.asarray([0.3, -0.7], jnp.float32),
                        atol=1e-3, rtol=1e-4)

    print("KERNEL_OK")
</pallas_src>

<mosaic_0001>
module attributes {stable_mosaic.version = 11 : i64} {
  func.func @_benchmark_kernel(%arg0: i32, %arg1: memref<1xi32, #tpu.memory_space<smem>>, %arg2: memref<8x16xf32, #tpu.memory_space<vmem>>, %arg3: memref<2x8xf32, #tpu.memory_space<vmem>>, %arg4: memref<2x8xf32, #tpu.memory_space<vmem>>) attributes {dimension_semantics = [#tpu.dimension_semantics<parallel>], iteration_bounds = array<i64: 1>, scalar_prefetch = 1 : i64, scratch_operands = 0 : i64, tpu.core_type = #tpu.core_type<tc>, window_params = [{transform_indices = @transform_0, window_bounds = array<i64: 8, 16>}, {transform_indices = @transform_1, window_bounds = array<i64: 2, 8>}, {transform_indices = @transform_2, window_bounds = array<i64: 2, 8>}]} {
    %c0 = arith.constant 0 : index
    %c0_0 = arith.constant 0 : index
    %0 = vector.load %arg2[%c0, %c0_0] : memref<8x16xf32, #tpu.memory_space<vmem>>, vector<8x16xf32>
    %1 = vector.extract_strided_slice %0 {offsets = [0, 0], sizes = [1, 16], strides = [1, 1]} : vector<8x16xf32> to vector<1x16xf32>
    %cst = arith.constant 0.000000e+00 : f32
    %2 = vector.broadcast %cst : f32 to vector<1x16xf32>
    %3 = arith.mulf %1, %2 : vector<1x16xf32>
    %cst_1 = arith.constant 1.000000e+00 : f32
    %4 = vector.broadcast %cst_1 : f32 to vector<1x16xf32>
    %5 = arith.addf %3, %4 : vector<1x16xf32>
    %cst_2 = arith.constant 5.000000e-01 : f32
    %6 = vector.broadcast %cst_2 : f32 to vector<8x16xf32>
    %7 = arith.subf %0, %6 : vector<8x16xf32>
    %8 = arith.mulf %7, %7 : vector<8x16xf32>
    %cst_3 = arith.constant dense<0.000000e+00> : vector<1x8xf32>
    %9 = tpu.matmul %5, %8, %cst_3 {dimension_numbers = #tpu.dot_dimension_numbers<[1], [1], [0], [0], [0, 0, 1, 0], [], []>, precision = #tpu.contract_precision<fp32>} : vector<1x16xf32>, vector<8x16xf32>, vector<1x8xf32> -> vector<1x8xf32>
    %cst_4 = arith.constant 0.000000e+00 : f32
    %10 = vector.broadcast %cst_4 : f32 to vector<1x8xf32>
    %11 = arith.subf %10, %9 : vector<1x8xf32>
    %c0_5 = arith.constant 0 : index
    %c0_6 = arith.constant 0 : index
    %12 = vector.load %arg3[%c0_5, %c0_6] : memref<2x8xf32, #tpu.memory_space<vmem>>, vector<1x8xf32>
    tpu.vector_store %arg3[%c0_5, %c0_6], %11 {strides = array<i32>} : memref<2x8xf32, #tpu.memory_space<vmem>>, vector<1x8xf32>,
    %cst_7 = arith.constant 2.500000e-01 : f32
    %13 = vector.broadcast %cst_7 : f32 to vector<1x8xf32>
    %14 = arith.addf %11, %13 : vector<1x8xf32>
    %c0_8 = arith.constant 0 : index
    %c0_9 = arith.constant 0 : index
    %15 = vector.load %arg4[%c0_8, %c0_9] : memref<2x8xf32, #tpu.memory_space<vmem>>, vector<1x8xf32>
    tpu.vector_store %arg4[%c0_8, %c0_9], %14 {strides = array<i32>} : memref<2x8xf32, #tpu.memory_space<vmem>>, vector<1x8xf32>,
    %cst_10 = arith.constant 1.000000e+00 : f32
    %16 = vector.broadcast %cst_10 : f32 to vector<8x16xf32>
    %17 = arith.subf %0, %16 : vector<8x16xf32>
    %18 = arith.mulf %17, %17 : vector<8x16xf32>
    %cst_11 = arith.constant dense<0.000000e+00> : vector<1x8xf32>
    %19 = tpu.matmul %5, %18, %cst_11 {dimension_numbers = #tpu.dot_dimension_numbers<[1], [1], [0], [0], [0, 0, 1, 0], [], []>, precision = #tpu.contract_precision<fp32>} : vector<1x16xf32>, vector<8x16xf32>, vector<1x8xf32> -> vector<1x8xf32>
    %cst_12 = arith.constant 0.000000e+00 : f32
    %20 = vector.broadcast %cst_12 : f32 to vector<1x8xf32>
    %21 = arith.subf %20, %19 : vector<1x8xf32>
    %c1 = arith.constant 1 : index
    %c0_13 = arith.constant 0 : index
    %22 = vector.load %arg3[%c1, %c0_13] : memref<2x8xf32, #tpu.memory_space<vmem>>, vector<1x8xf32>
    tpu.vector_store %arg3[%c1, %c0_13], %21 {strides = array<i32>} : memref<2x8xf32, #tpu.memory_space<vmem>>, vector<1x8xf32>,
    %cst_14 = arith.constant -5.000000e-01 : f32
    %23 = vector.broadcast %cst_14 : f32 to vector<1x8xf32>
    %24 = arith.addf %21, %23 : vector<1x8xf32>
    %c1_15 = arith.constant 1 : index
    %c0_16 = arith.constant 0 : index
    %25 = vector.load %arg4[%c1_15, %c0_16] : memref<2x8xf32, #tpu.memory_space<vmem>>, vector<1x8xf32>
    tpu.vector_store %arg4[%c1_15, %c0_16], %24 {strides = array<i32>} : memref<2x8xf32, #tpu.memory_space<vmem>>, vector<1x8xf32>,
    return
  }
  func.func @transform_0(%arg0: i32, %arg1: memref<1xi32, #tpu.memory_space<smem>>) -> (i32, i32) {
    %c0_i32 = arith.constant 0 : i32
    %c0_i32_0 = arith.constant 0 : i32
    return %arg0, %c0_i32 : i32, i32
  }
  func.func @transform_1(%arg0: i32, %arg1: memref<1xi32, #tpu.memory_space<smem>>) -> (i32, i32) {
    %c0_i32 = arith.constant 0 : i32
    %c0_i32_0 = arith.constant 0 : i32
    return %c0_i32, %arg0 : i32, i32
  }
  func.func @transform_2(%arg0: i32, %arg1: memref<1xi32, #tpu.memory_space<smem>>) -> (i32, i32) {
    %c0_i32 = arith.constant 0 : i32
    %c0_i32_0 = arith.constant 0 : i32
    return %c0_i32, %arg0 : i32, i32
  }
}

</mosaic_0001>

<bundles_post_ra>
// kernel: tpu_custom_call.1
= control target key start
LH: loop header
LB: loop body
LE: loop exit
PB: predicated region body
PF: predicated region fallthrough
CT: control target
= control target key end

     0   :  { %10 = vsyncpa [#allocation5], 0  ;;  %s498_s0 = inlined_call_operand.<no memory space> [shape: s32[1], index: 0, kind: input, shape index: {}]   ;;  %s499_s1 = inlined_call_operand.hbm [shape: f32[8,16], index: 1, kind: input, shape index: {}]   ;;  %s500_s2 = inlined_call_operand.hbm [shape: f32[2,8], index: 2, kind: output, shape index: {0}]   ;;  %s501_s3 = inlined_call_operand.hbm [shape: f32[2,8], index: 3, kind: output, shape index: {1}]  }
   0x1   :  { %11 = vsyncpa [#allocation6], 0 }
   0x2   :  { %12 = vsyncpa [#allocation9], 0  ;;  %s18_s14 = sshll.u32 %s499_s1, 4  ;;  %s462_s15 = smov [#allocation4]   ;;  %s19_s14 = int_to_ptr.hbm [resolvable:$true] %s18_s14 }
   0x3   :  { %s20_s16 = sshll.u32 %s462_s15, 4  ;;  %s21_s16 = int_to_ptr.vmem [resolvable:$true] %s20_s16 }
   0x4   :  { %23 = dma.hbm_to_vmem [thread:$0]  %s19_s14, 128, %s21_s16, [#allocation5]  }
   0x5   :  { %456 = dma.done.wait [#allocation5], 128  }
   0x6   :  { %457 = vsyncadd [#allocation5], 4294967168  ;;  %v28_v0 = vld [vmem:[#allocation4] sm:$0xff]  ;;  %vm33_vm0 = vcmask 130048   ;;  %vm187_vm1 = vcmask 57344   ;;  %s463_s0 = smov [#allocation7]  }
   0x7   :  { %v379_v1 = vadd.f32 -0.5, %v28_v0  ;;  %v29_v2 = vmul.f32 0.0, %v28_v0  ;;  %v380_v3 = vadd.f32 -1.0, %v28_v0  ;;  %s351_s1 = sshll.u32 %s463_s0, 4  ;;  %s353_s19 = sshll.u32 %s500_s2, 4  ;;  %s352_s1 = int_to_ptr.vmem [resolvable:$true] %s351_s1  ;;  %s354_s19 = int_to_ptr.hbm [resolvable:$true] %s353_s19 }
   0x8   :  { %s464_s20 = smov [#allocation8]   ;;  %s364_s24 = sshll.u32 %s501_s3, 4  ;;  %s365_s24 = int_to_ptr.hbm [resolvable:$true] %s364_s24 }
   0x9   :  { %v32_v4 = vmul.f32 %v379_v1, %v379_v1  ;;  %v30_v5 = vadd.f32 1.0, %v29_v2  ;;  %v192_v6 = vmul.f32 %v380_v3, %v380_v3  ;;  %s362_s21 = sshll.u32 %s464_s20, 4  ;;  %s363_s21 = int_to_ptr.vmem [resolvable:$true] %s362_s21 }
   0xb   :  { %v38_v7 = vsel %vm33_vm0, %v32_v4, 0  ;;  %v35_v8 = vsel %vm33_vm0, %v30_v5, 0  ;;  %v194_v9 = vsel %vm33_vm0, %v192_v6, 0 }
   0xc   :  { %v55_v10 = vand.u32 4294901760, %v38_v7  ;;  %v57_v11 = vand.u32 4294901760, %v35_v8  ;;  %v211_v12 = vand.u32 4294901760, %v194_v9 }
   0xe   :  { %v82_v13 = vsub.f32 %v38_v7, %v55_v10  ;;  %132 = vmatpush.xpose.msra.mxu3 %v55_v10  ;;  %56 = vmatpush.xpose.msra.mxu0 %v55_v10  ;;  %v58_v14 = vsub.f32 %v35_v8, %v57_v11  ;;  %v238_v15 = vsub.f32 %v194_v9, %v211_v12 }
  0x10   :  { %109 = vmatpush.xpose.msra.mxu2 %v82_v13  ;;  %v59_v16 = vand.u32 4294901760, %v58_v14  ;;  %v83_v17 = vand.u32 4294901760, %v82_v13  ;;  %v239_v18 = vand.u32 4294901760, %v238_v15 }
  0x12   :  { %136 = vmatmul.f32.vlgmr.msra.gmra.mxu3 %v59_v16  ;;  %v60_v19 = vsub.f32 %v58_v14, %v59_v16  ;;  %v84_v20 = vsub.f32 %v82_v13, %v83_v17  ;;  %158 = vmatpush.xpose.msrb.mxu0 %v83_v17  ;;  %v240_v21 = vsub.f32 %v238_v15, %v239_v18 }
  0x13   :  { %112 = vmatmul.f32.vlgmr.msra.gmra.mxu2 %v58_v14 }
  0x14   :  { %212 = vmatpush.xpose.msrb.mxu2 %v211_v12  ;;  %v61_v22 = vand.u32 4294901760, %v60_v19  ;;  %v85_v23 = vand.u32 4294901760, %v84_v20  ;;  %v241_v24 = vand.u32 4294901760, %v240_v21 }
  0x16   :  { %62 = vmatmul.f32.vlgmr.msra.gmra.mxu0 %v61_v22  ;;  %86 = vmatpush.xpose.msra.mxu1 %v85_v23 }
  0x17   :  { %242 = vmatpush.xpose.msrb.mxu3 %v241_v24  ;;  %265 = vmatpush.xpose.msra.mxu0 %v238_v15 }
  0x18   :  { %314 = vmatpush.xpose.msra.mxu2 %v239_v18 }
  0x19   :  { %88 = vmatmul.f32.vlgmr.msra.gmra.mxu1 %v57_v11 }
  0x1a   :  { %180 = vmatpush.xpose.msrb.mxu1 %v55_v10  ;;  %244 = vmatmul.f32.vlgmr.msrb.gmra.mxu3 %v57_v11 }
  0x1b   :  { %336 = vmatpush.xpose.msra.mxu3 %v211_v12  ;;  %218 = vmatmul.f32.vlgmr.msrb.gmra.mxu2 %v61_v22 }
  0x1e   :  { %288 = vmatpush.xpose.msra.mxu1 %v211_v12  ;;  %160 = vmatmul.f32.vlgmr.msrb.gmra.mxu0 %v57_v11 }
  0x21   :  { %182 = vmatmul.f32.vlgmr.msrb.gmra.mxu1 %v57_v11 }
  0x22   :  { %338 = vmatmul.f32.vlgmr.msra.gmra.mxu3 %v57_v11 }
  0x23   :  { %316 = vmatmul.f32.vlgmr.msra.gmra.mxu2 %v57_v11 }
  0x26   :  { %268 = vmatmul.f32.vlgmr.msra.gmra.mxu0 %v58_v14 }
  0x29   :  { %292 = vmatmul.f32.vlgmr.msra.gmra.mxu1 %v59_v16 }
  0x93   :  { %v63_v25 = vpop.f32.mrf.mxu0 }
  0x95   :  { %v137_v26 = vpop.f32.mrf.mxu3 }
  0x96   :  { %v89_v27 = vpop.f32.mrf.mxu1  ;;  %v113_v28 = vpop.f32.mrf.mxu2 }
  0x97   :  { %v90_v29 = vadd.f32 %v89_v27, %v63_v25 }
  0x99   :  { %v114_v30 = vadd.f32 %v113_v28, %v90_v29 }
  0x9b   :  { %v138_v31 = vadd.f32 %v137_v26, %v114_v30  ;;  %v161_v32 = vpop.f32.mrf.mxu0 }
  0x9d   :  { %v162_v33 = vadd.f32 %v161_v32, %v138_v31  ;;  %v245_v34 = vpop.f32.mrf.mxu3 }
  0x9e   :  { %v183_v35 = vpop.f32.mrf.mxu1  ;;  %v219_v36 = vpop.f32.mrf.mxu2 }
  0x9f   :  { %v184_v37 = vadd.f32 %v183_v35, %v162_v33  ;;  %v246_v38 = vadd.f32 %v245_v34, %v219_v36 }
  0xa1   :  { %v186_v39 = vsub.f32 0.0, %v184_v37 }
  0xa3   :  { %188 = vst.msk [vmem:[#allocation7] sm:$0x1] %vm187_vm1, %v186_v39  ;;  %v189_v40 = vadd.f32 0.25, %v186_v39  ;;  %v269_v41 = vpop.f32.mrf.mxu0 }
  0xa4   :  { %v270_v42 = vadd.f32 %v269_v41, %v246_v38 }
  0xa5   :  { %190 = vst.msk [vmem:[#allocation8] sm:$0x1] %vm187_vm1, %v189_v40  ;;  %v339_v46 = vpop.f32.mrf.mxu3 }
  0xa6   :  { %v293_v43 = vpop.f32.mrf.mxu1  ;;  %v317_v44 = vpop.f32.mrf.mxu2 }
  0xa7   :  { %v294_v45 = vadd.f32 %v293_v43, %v270_v42 }
  0xa9   :  { %v318_v47 = vadd.f32 %v317_v44, %v294_v45 }
  0xab   :  { %v340_v48 = vadd.f32 %v339_v46, %v318_v47 }
  0xad   :  { %v342_v49 = vsub.f32 0.0, %v340_v48 }
  0xaf   :  { %343 = vst.msk [vmem:[#allocation7 + $0x1] sm:$0x1] %vm187_vm1, %v342_v49  ;;  %v344_v50 = vadd.f32 -0.5, %v342_v49 }
  0xb0   :  { %356 = dma.vmem_to_hbm [thread:$0]  %s352_s1, 32, %s354_s19, [#allocation6]  }
  0xb1   :  { %345 = vst.msk [vmem:[#allocation8 + $0x1] sm:$0x1] %vm187_vm1, %v344_v50 }
  0xb2   :  { %367 = dma.vmem_to_hbm [thread:$0]  %s363_s21, 32, %s365_s24, [#allocation9]  }
  0xb3   :  { %458 = dma.done.wait [#allocation6], 32  }
  0xb4   :  { %459 = vsyncadd [#allocation6], 4294967264 }
  0xb5   :  { %460 = dma.done.wait [#allocation9], 32  }
  0xb6   :  { %461 = vsyncadd [#allocation9], 4294967264 }
  0xb7   :  { %376 = vsyncpa [#allocation5], 1 }
  0xb8   :  { %377 = vsyncpa [#allocation6], 1 }
  0xb9   :  { %378 = vsyncpa [#allocation9], 1 }

</bundles_post_ra>
